<compile_context>
chip_gen: v7x
topology: tpu7x:2x2x1
jax: 0.10.0
libtpu: 0.0.40
codegen_flags: <defaults>
</compile_context>

<pallas_src>
import jax
import jax.numpy as jnp
from jax.experimental import pallas as pl
from jax.experimental.pallas import tpu as pltpu


def neural_memory_kernel(w_ref, v1_ref, v2_ref, out_ref):
    """One lane-dense block of tN fused, independent forward() calls.

    w_ref  : [B, 2, tN] f32 per-call read weights (w1, w2), hoisted/precomputed
             in the wrapper (the global-max inside min() couples all batch
             rows, so it cannot be tiled along the call axis).
    v1_ref : [B, R, tN] value pushed first  (bottom of stack).
    v2_ref : [B, R, tN] value pushed second (top of stack).
    out_ref: [B, R, tN] readcontent.
    """
    w = w_ref[...]                         # [B, 2, tN] f32
    w1 = w[:, 0:1, :]                      # broadcast over R (sublanes)
    w2 = w[:, 1:2, :]
    # f32 accumulation even for bf16 values; cast only the final product.
    out_ref[...] = (v2_ref[...] * w2 + v1_ref[...] * w1).astype(out_ref.dtype)


def _pick_call_block(n, max_call_block):
    """Largest multiple of 128 lanes <= max_call_block that keeps >= 2 grid
    steps (when N allows), so v7x's two TensorCores both get work."""
    half = pl.cdiv(pl.cdiv(n, 2), 128) * 128   # round_up(N/2, 128)
    return max(128, min(max_call_block, half))


def neural_memory_forward_fused(u, d1, d2, v1, v2, *, max_call_block=2048):
    """Fused forward() for N independent NeuralMemory calls.

    u, d1, d2 : [B, N]     read / push strengths for N calls.
    v1, v2    : [B, R, N]  pushed values, call-minor (lane-dense) layout.
    returns   : [B, R, N]  readcontent per call (dtype of v1).
    """
    B, N = u.shape
    _, R, _ = v1.shape

    # Per-call read weights, computed once in f32 (PyTorch reference precision):
    #   i = 1 (top of stack): w2 = min(d2, max_b(u - 0))
    #   i = 0               : w1 = min(d1, max_b(u - d2))
    uf, d1f, d2f = (x.astype(jnp.float32) for x in (u, d1, d2))
    m2 = jnp.max(uf, axis=0)                       # [N] global (batch) max
    m1 = jnp.max(uf - d2f, axis=0)                 # [N]
    w = jnp.stack([jnp.minimum(d1f, m1[None, :]),
                   jnp.minimum(d2f, m2[None, :])], axis=1)   # [B, 2, N] f32

    call_block = _pick_call_block(N, max_call_block)
    grid = (pl.cdiv(N, call_block),)   # ragged tail handled by Pallas directly:
                                       # no pad of v1/v2, no output slice.
    itemsize = jnp.dtype(v1.dtype).itemsize
    return pl.pallas_call(
        neural_memory_kernel,
        out_shape=jax.ShapeDtypeStruct((B, R, N), v1.dtype),
        grid=grid,
        in_specs=[
            pl.BlockSpec((B, 2, call_block), lambda n: (0, 0, n)),
            pl.BlockSpec((B, R, call_block), lambda n: (0, 0, n)),
            pl.BlockSpec((B, R, call_block), lambda n: (0, 0, n)),
        ],
        out_specs=pl.BlockSpec((B, R, call_block), lambda n: (0, 0, n)),
        compiler_params=pltpu.CompilerParams(
            dimension_semantics=("parallel",)),   # 2-TC sharding on v7x
        cost_estimate=pl.CostEstimate(
            flops=3 * B * R * N,
            transcendentals=0,
            bytes_accessed=3 * B * R * N * itemsize + 2 * B * N * 4),
    )(w, v1, v2)


def neural_memory_forward(u, d1, d2, v1, v2):
    """Original single-call API: u, d1, d2 [B,1]; v1, v2 [B,R] -> [B,R].

    A single call is ~256 bytes of useful work; routing it through Pallas
    would be pure launch + padded-DMA overhead, so evaluate the elementwise
    expression directly in XLA (per the perf review).
    """
    uf, d1f, d2f = (x.astype(jnp.float32) for x in (u, d1, d2))
    w2 = jnp.minimum(d2f, jnp.max(uf))             # min(d2, max(u - 0))
    w1 = jnp.minimum(d1f, jnp.max(uf - d2f))       # min(d1, max(u - d2))
    return (v2 * w2 + v1 * w1).astype(v1.dtype)


def _ref_single_call(u_n, d1_n, d2_n, v1_n, v2_n):
    """Pure-JAX reference mirroring the PyTorch per-call semantics exactly."""
    m2 = jnp.max(u_n)                     # torch.max(u - 0): global over batch
    w2 = jnp.minimum(d2_n, m2)            # [B]
    m1 = jnp.max(u_n - d2_n)              # torch.max(u - strength_used)
    w1 = jnp.minimum(d1_n, m1)
    return v2_n * w2[:, None] + v1_n * w1[:, None]    # [B, R]


if __name__ == "__main__":
    key = jax.random.PRNGKey(0)
    # batch_size=2, read_size=32, 200 fused calls (deliberately NOT a multiple
    # of 128 to exercise the ragged last block with no wrapper pad/slice).
    B, R, N = 2, 32, 200
    ku, k1, k2, kv1, kv2 = jax.random.split(key, 5)
    u = jax.random.uniform(ku, (B, N), jnp.float32)      # read strengths
    d1 = jax.random.uniform(k1, (B, N), jnp.float32)     # push strength 1
    d2 = jax.random.uniform(k2, (B, N), jnp.float32)     # push strength 2
    v1 = jax.random.normal(kv1, (B, R, N), jnp.float32)  # pushed value 1
    v2 = jax.random.normal(kv2, (B, R, N), jnp.float32)  # pushed value 2

    out = jax.block_until_ready(neural_memory_forward_fused(u, d1, d2, v1, v2))

    ref = jax.vmap(_ref_single_call, in_axes=(1, 1, 1, 2, 2), out_axes=2)(
        u, d1, d2, v1, v2)
    assert out.shape == (B, R, N) and out.dtype == jnp.float32
    assert jnp.allclose(out, ref, atol=1e-6, rtol=1e-6)

    # Original single-call API (plain jnp fast path).
    out1 = jax.block_until_ready(
        neural_memory_forward(u[:, :1], d1[:, :1], d2[:, :1],
                              v1[:, :, 0], v2[:, :, 0]))
    assert out1.shape == (B, R)
    assert jnp.allclose(out1, ref[:, :, 0], atol=1e-6, rtol=1e-6)

    print("KERNEL_OK")
</pallas_src>

<mosaic_0001>
module attributes {stable_mosaic.version = 11 : i64} {
  func.func @neural_memory_kernel(%arg0: i32, %arg1: memref<2x2x128xf32, #tpu.memory_space<vmem>>, %arg2: memref<2x32x128xf32, #tpu.memory_space<vmem>>, %arg3: memref<2x32x128xf32, #tpu.memory_space<vmem>>, %arg4: memref<2x32x128xf32, #tpu.memory_space<vmem>>) attributes {dimension_semantics = [#tpu.dimension_semantics<parallel>], iteration_bounds = array<i64: 2>, scalar_prefetch = 0 : i64, scratch_operands = 0 : i64, tpu.core_type = #tpu.core_type<tc>, window_params = [{transform_indices = @transform_0, window_bounds = array<i64: 2, 2, 128>}, {transform_indices = @transform_1, window_bounds = array<i64: 2, 32, 128>}, {transform_indices = @transform_2, window_bounds = array<i64: 2, 32, 128>}, {transform_indices = @transform_3, window_bounds = array<i64: 2, 32, 128>}]} {
    %c0 = arith.constant 0 : index
    %c0_0 = arith.constant 0 : index
    %c0_1 = arith.constant 0 : index
    %0 = vector.load %arg1[%c0, %c0_0, %c0_1] : memref<2x2x128xf32, #tpu.memory_space<vmem>>, vector<2x2x128xf32>
    %1 = vector.extract_strided_slice %0 {offsets = [0, 0, 0], sizes = [2, 1, 128], strides = [1, 1, 1]} : vector<2x2x128xf32> to vector<2x1x128xf32>
    %2 = vector.extract_strided_slice %0 {offsets = [0, 1, 0], sizes = [2, 1, 128], strides = [1, 1, 1]} : vector<2x2x128xf32> to vector<2x1x128xf32>
    %c0_2 = arith.constant 0 : index
    %c0_3 = arith.constant 0 : index
    %c0_4 = arith.constant 0 : index
    %3 = vector.load %arg3[%c0_2, %c0_3, %c0_4] : memref<2x32x128xf32, #tpu.memory_space<vmem>>, vector<2x32x128xf32>
    %4 = vector.broadcast %2 : vector<2x1x128xf32> to vector<2x32x128xf32>
    %5 = arith.mulf %3, %4 : vector<2x32x128xf32>
    %c0_5 = arith.constant 0 : index
    %c0_6 = arith.constant 0 : index
    %c0_7 = arith.constant 0 : index
    %6 = vector.load %arg2[%c0_5, %c0_6, %c0_7] : memref<2x32x128xf32, #tpu.memory_space<vmem>>, vector<2x32x128xf32>
    %7 = vector.broadcast %1 : vector<2x1x128xf32> to vector<2x32x128xf32>
    %8 = arith.mulf %6, %7 : vector<2x32x128xf32>
    %9 = arith.addf %5, %8 : vector<2x32x128xf32>
    %c0_8 = arith.constant 0 : index
    %c0_9 = arith.constant 0 : index
    %c0_10 = arith.constant 0 : index
    %10 = vector.load %arg4[%c0_8, %c0_9, %c0_10] : memref<2x32x128xf32, #tpu.memory_space<vmem>>, vector<2x32x128xf32>
    tpu.vector_store %arg4[%c0_8, %c0_9, %c0_10], %9 {strides = array<i32>} : memref<2x32x128xf32, #tpu.memory_space<vmem>>, vector<2x32x128xf32>,
    return
  }
  func.func @transform_0(%arg0: i32) -> (i32, i32, i32) {
    %c0_i32 = arith.constant 0 : i32
    %c0_i32_0 = arith.constant 0 : i32
    %c0_i32_1 = arith.constant 0 : i32
    return %c0_i32, %c0_i32_0, %arg0 : i32, i32, i32
  }
  func.func @transform_1(%arg0: i32) -> (i32, i32, i32) {
    %c0_i32 = arith.constant 0 : i32
    %c0_i32_0 = arith.constant 0 : i32
    %c0_i32_1 = arith.constant 0 : i32
    return %c0_i32, %c0_i32_0, %arg0 : i32, i32, i32
  }
  func.func @transform_2(%arg0: i32) -> (i32, i32, i32) {
    %c0_i32 = arith.constant 0 : i32
    %c0_i32_0 = arith.constant 0 : i32
    %c0_i32_1 = arith.constant 0 : i32
    return %c0_i32, %c0_i32_0, %arg0 : i32, i32, i32
  }
  func.func @transform_3(%arg0: i32) -> (i32, i32, i32) {
    %c0_i32 = arith.constant 0 : i32
    %c0_i32_0 = arith.constant 0 : i32
    %c0_i32_1 = arith.constant 0 : i32
    return %c0_i32, %c0_i32_0, %arg0 : i32, i32, i32
  }
}

</mosaic_0001>

<bundles_post_ra>
// kernel: tpu_custom_call.1
= control target key start
LH: loop header
LB: loop body
LE: loop exit
PB: predicated region body
PF: predicated region fallthrough
CT: control target
= control target key end

     0   :  { %s1022_s0 = inlined_call_operand.hbm [shape: f32[2,2,200], index: 0, kind: input, shape index: {}]   ;;  %s1023_s1 = inlined_call_operand.hbm [shape: f32[2,32,200], index: 1, kind: input, shape index: {}]   ;;  %s1024_s2 = inlined_call_operand.hbm [shape: f32[2,32,200], index: 2, kind: input, shape index: {}]   ;;  %s1025_s3 = inlined_call_operand.hbm [shape: f32[2,32,200], index: 3, kind: output, shape index: {}]  }
   0x1   :  { %1031 = sst [smem:[#allocation12_spill]] %s1022_s0 }
   0x2   :  { %1032 = sst [smem:[#allocation13_spill]] %s1023_s1 }
   0x3   :  { %8 = vsyncpa [#allocation3], 0 }
   0x4   :  { %10 = vsyncpa [#allocation3 + $0x1], 0 }
   0x5   :  { %11 = vsyncpa [#allocation6], 0 }
   0x6   :  { %13 = vsyncpa [#allocation6 + $0x1], 0 }
   0x7   :  { %14 = vsyncpa [#allocation4], 0 }
   0x8   :  { %16 = vsyncpa [#allocation4 + $0x1], 0  ;;  %s736_s12 = smov 0   ;;  %s738_s13 = smov 0  }
   0x9   :  { %s740_s14 = smov 0   ;;  %s742_s15 = smov 0  }
   0xa LB: > { %s757_s16 = sadd.s32 4294967295, %s701_s15   ;;  %s458_s17 = sadd.s32 4294967294, %s701_s15   ;;  %s701_s15 = sphi %s742_s15, %s1052_s15   ;;  %s697_s14 = sphi %s740_s14, %s1051_s14   ;;  %s693_s13 = sphi %s738_s13, %s1050_s13   ;;  %s689_s12 = sphi %s736_s12, %s1049_s12  }
   0xb   : > { %s761_s18 = sadd.s32 1, %s701_s15   ;;  %s29_s19 = sadd.s32 1, %s697_s14 }
   0xc   : > { %s26_s20 = ssub.s32 %s701_s15, %s761_s18  ;;  %p36_p0 = scmp.ne.s32.totalorder %s697_s14, %s693_s13 }
   0xd   : > { %p27_p1 = scmp.eq.s32.totalorder %s26_s20, 0  ;;  %p37_p2 = scmp.eq.s32.totalorder %s701_s15, 0 }
   0xe   : > { %p42_p3 = scmp.ne.s32.totalorder %s693_s13, %s689_s12  ;;  %p43_p4 = scmp.eq.s32.totalorder %s757_s16, 0 }
   0xf   : > { %s773_s21 = scalar_select %p27_p1, %s697_s14, %s29_s19  }
  0x10   : > { %p38_p5 = por %p37_p2, %p36_p0  ;;  %p775_p6 = por %p43_p4, %p42_p3 }
  0x11   : > { %p118_p7 = scmp.eq.s32.totalorder %s757_s16, 1  ;;  %p124_p8 = scmp.eq.s32.totalorder %s458_s17, 1 }
  0x12   : > { %s1033_s22 = scalar_select %p775_p6, 1, 0 }
  0x13   : > { %p498_p10 = scmp.lt.s32.totalorder %s701_s15, 2  ;;  %p782_p11 = por %p118_p7, %p36_p0 }
  0x14   : > { %p786_p12 = por %p124_p8, %p42_p3  ;;  %s791_s25 = sand.u32 1, %s697_s14  }
  0x15   : > { %s1034_s23 = scalar_select %p782_p11, 1, 0 }
  0x16   : > { %s1035_s24 = scalar_select %p786_p12, 1, 0 }
  0x17   : > { %p793_p13 = pnand %p498_p10, %p38_p5  ;;  %s164_s27 = sand.u32 1, %s701_s15  }
  0x18   : > { %s463_s28 = sshll.u32 %s791_s25, 6  ;;  %s464_s29 = sshll.u32 %s701_s15, 7 }
  0x19   : > { %s1037_s1 = sld [smem:[#allocation13_spill]]  ;;  %s168_s6 = scalar_lea.vmem [#allocation5], %s463_s28 }
  0x1a   : > { %s174_s7 = sshll.u32 %s168_s6, 4  ;;  %s811_s8 = scalar_lea.sflag [#allocation6], %s164_s27  ;;  %s809_s7 = int_to_ptr.vmem [resolvable:$true] %s174_s7 }
  0x1b   : > { %p817_p1 = pneg %p793_p13 }
  0x1f   : > { %s805_s5 = scalar_lea.hbm %s1037_s1, %s464_s29  ;;  %s546_s19 = scalar_lea.hbm %s1037_s1, 2048 }
  0x20   : > { %s541_s9 = scalar_lea.hbm %s805_s5, 1024  ;;  %p547_p4 = scmp.lt.u32.totalorder %s805_s5, %s1037_s1 }
  0x21   : > { %p542_p0 = scmp.ne.s32.totalorder %s805_s5, %s541_s9  ;;  %p548_p5 = scmp.lt.u32.totalorder %s546_s19, %s541_s9 }
  0x22   : > { %p550_p8 = scmp.lt.u32.totalorder %s541_s9, %s805_s5 }
  0x23   : > { %p544_p2 = pnand %p817_p1, %p542_p0  ;;  %p549_p7 = por %p548_p5, %p547_p4 }
  0x25   : > { %p545_p3 = pneg %p544_p2  ;;  %p551_p10 = por %p550_p8, %p549_p7 }
  0x27   : > { %p552_p9 = pnand %p551_p10, %p545_p3 }
  0x29   : > { %555 = shalt.err (!%p552_p9)
}
  0x2a   : > { %s556_s27 = scalar_lea.vmem %s809_s7, 1024  ;;  %s703_s4 = smov [#allocation5]  }
  0x2b   : > { %p557_p0 = scmp.ne.s32.totalorder %s809_s7, %s556_s27  ;;  %s561_s6 = sshll.u32 %s703_s4, 4  ;;  %s562_s6 = int_to_ptr.vmem [resolvable:$false] %s561_s6 }
  0x2c   : > { %s563_s11 = scalar_lea.vmem %s562_s6, 2048  ;;  %p564_p11 = scmp.lt.s32.totalorder %s809_s7, %s562_s6 }
  0x2d   : > { %p559_p2 = pnand %p557_p0, %p817_p1  ;;  %p565_p6 = scmp.lt.s32.totalorder %s563_s11, %s556_s27 }
  0x2f   : > { %p560_p12 = pneg %p559_p2  ;;  %p566_p4 = por %p565_p6, %p564_p11 }
  0x31   : > { %p567_p5 = pnand %p566_p4, %p560_p12 }
  0x33   : > { %570 = shalt.err (!%p567_p5)
}
  0x34   : > { %s1028_s9 = smov 256   ;;  %s1029_s17 = smov 128  }
  0x35   : > { %s1030_s19 = smov 8   ;;  %s849_s27 = scalar_lea.hbm %s1024_s2, %s464_s29 }
  0x36   : > { %490 = dma.hbm_to_vmem [thread:$0]  (!%p793_p13), %s805_s5, 1024, %s809_s7, %s811_s8, %s1028_s9, %s1029_s17, %s1030_s19  }
  0x37   : > { %s188_s4 = scalar_lea.vmem [#allocation7], %s463_s28  ;;  %p467_p6 = scmp.ge.s32.totalorder %s701_s15, 1 }
  0x38   : > { %s194_s6 = sshll.u32 %s188_s4, 4  ;;  %p202_p9 = scmp.lt.s32.totalorder %s701_s15, 3  ;;  %s854_s6 = int_to_ptr.vmem [resolvable:$true] %s194_s6 }
  0x39   : > { %s461_s11 = sshll.u32 %s791_s25, 2  ;;  %s462_s5 = sshll.u32 %s701_s15, 5 }
  0x3a   : > { %p858_p11 = pnand %p467_p6, %p202_p9  ;;  %s148_s7 = scalar_lea.vmem [#allocation2], %s461_s11 }
  0x3b   : > { %s154_s9 = sshll.u32 %s148_s7, 4  ;;  %s1040_s0 = sld [smem:[#allocation12_spill]]  ;;  %s868_s9 = int_to_ptr.vmem [resolvable:$true] %s154_s9 }
  0x3c   : > { %s1039_s1 = scalar_select %p858_p11, 1, 0 }
  0x3d   : > { %s145_s28 = scalar_lea.sflag [#allocation3], %s791_s25 }
  0x41   : > { %s866_s29 = scalar_lea.hbm %s1040_s0, %s462_s5  ;;  %s576_s7 = scalar_lea.hbm %s1040_s0, 128 }
  0x42   : > { %s571_s30 = scalar_lea.hbm %s866_s29, 64  ;;  %p577_p8 = scmp.lt.u32.totalorder %s866_s29, %s1040_s0 }
  0x43   : > { %p572_p12 = scmp.ne.s32.totalorder %s866_s29, %s571_s30  ;;  %p578_p10 = scmp.lt.u32.totalorder %s576_s7, %s571_s30 }
  0x44   : > { %p580_p2 = scmp.lt.u32.totalorder %s571_s30, %s866_s29 }
  0x45   : > { %p574_p3 = pnand %p572_p12, %p817_p1  ;;  %p579_p0 = por %p578_p10, %p577_p8 }
  0x47   : > { %p575_p7 = pneg %p574_p3  ;;  %p581_p4 = por %p580_p2, %p579_p0 }
  0x49   : > { %p582_p5 = pnand %p581_p4, %p575_p7 }
  0x4b   : > { %585 = shalt.err (!%p582_p5)
}
  0x4c   : > { %s586_s5 = scalar_lea.vmem %s868_s9, 64  ;;  %s707_s20 = smov [#allocation2]  }
  0x4d   : > { %p587_p6 = scmp.ne.s32.totalorder %s868_s9, %s586_s5  ;;  %s591_s4 = sshll.u32 %s707_s20, 4  ;;  %s592_s4 = int_to_ptr.vmem [resolvable:$false] %s591_s4 }
  0x4e   : > { %s593_s19 = scalar_lea.vmem %s592_s4, 128  ;;  %p594_p3 = scmp.lt.s32.totalorder %s868_s9, %s592_s4 }
  0x4f   : > { %p589_p9 = pnand %p587_p6, %p817_p1  ;;  %p595_p11 = scmp.lt.s32.totalorder %s593_s19, %s586_s5 }
  0x51   : > { %p590_p12 = pneg %p589_p9  ;;  %p596_p8 = por %p595_p11, %p594_p3 }
  0x53   : > { %p597_p10 = pnand %p596_p8, %p590_p12 }
  0x55   : > { %600 = shalt.err (!%p597_p10)
}
  0x56   : > { %s708_s30 = smov 64   ;;  %s709_s11 = smov 32  }
  0x57   : > { %s710_s7 = smov 2   ;;  %s601_s17 = scalar_lea.hbm %s849_s27, 1024 }
  0x58   : > { %487 = dma.hbm_to_vmem [thread:$0]  (!%p793_p13), %s866_s29, 64, %s868_s9, %s145_s28, %s708_s30, %s709_s11, %s710_s7  }
  0x59   : > { %p602_p7 = scmp.ne.s32.totalorder %s849_s27, %s601_s17  ;;  %s606_s4 = scalar_lea.hbm %s1024_s2, 2048 }
  0x5a   : > { %p607_p2 = scmp.lt.u32.totalorder %s849_s27, %s1024_s2  ;;  %p608_p4 = scmp.lt.u32.totalorder %s606_s4, %s601_s17 }
  0x5b   : > { %p604_p11 = pnand %p602_p7, %p817_p1  ;;  %p610_p6 = scmp.lt.u32.totalorder %s601_s17, %s849_s27 }
  0x5c   : > { %p609_p5 = por %p608_p4, %p607_p2 }
  0x5d   : > { %p605_p0 = pneg %p604_p11 }
  0x5e   : > { %p611_p9 = por %p610_p6, %p609_p5 }
  0x60   : > { %p612_p12 = pnand %p611_p9, %p605_p0 }
  0x62   : > { %615 = shalt.err (!%p612_p12)
}
  0x63   : > { %s616_s25 = scalar_lea.vmem %s854_s6, 1024  ;;  %s711_s9 = smov [#allocation7]  }
  0x64   : > { %p617_p3 = scmp.ne.s32.totalorder %s854_s6, %s616_s25  ;;  %s621_s29 = sshll.u32 %s711_s9, 4  ;;  %s622_s29 = int_to_ptr.vmem [resolvable:$false] %s621_s29 }
  0x65   : > { %s623_s0 = scalar_lea.vmem %s622_s29, 2048  ;;  %p624_p7 = scmp.lt.s32.totalorder %s854_s6, %s622_s29 }
  0x66   : > { %p619_p8 = pnand %p617_p3, %p817_p1  ;;  %p625_p11 = scmp.lt.s32.totalorder %s623_s0, %s616_s25 }
  0x68   : > { %p620_p10 = pneg %p619_p8  ;;  %p626_p2 = por %p625_p11, %p624_p7 }
  0x6a   : > { %p627_p4 = pnand %p626_p2, %p620_p10 }
  0x6c   : > { %630 = shalt.err (!%p627_p4)
}
  0x6d   : > { %s1041_s28 = smov 8   ;;  %s1042_s30 = smov 128  }
  0x6e   : > { %s1043_s11 = smov 256   ;;  %p1044_p1 = scmp.ne.s32.totalorder %s1039_s1, 0 }
  0x6f   : > { %493 = dma.hbm_to_vmem [thread:$0]  (!%p793_p13), %s849_s27, 1024, %s854_s6, %s811_s8, %s1043_s11, %s1042_s30, %s1041_s28  }
  0x70   : > { %206 = sbr.rel (%p1044_p1) target bundleno = 156 (0x9c), region = 32  ;;  %s922_s10 = sand.u32 (!%p1044_p1), 1, %s693_s13  }
  0x71   : > { %s468_s7 = sshll.u32 (!%p1044_p1), %s922_s10, 2  ;;  %s209_s17 = scalar_lea.sflag (!%p1044_p1), [#allocation3], %s922_s10 }
  0x72   : > { %s212_s5 = scalar_lea.vmem (!%p1044_p1), [#allocation2], %s468_s7  ;;  %p1045_p0 = scmp.ne.s32.totalorder (!%p1044_p1), %s1033_s22, 0 }
  0x77   : > { %676 = dma.done.wait (%p1045_p0), %s209_s17, 64  }
  0x78   : > { %678 = vsyncadd (%p1045_p0), %s209_s17, 4294967232  ;;  %s217_s26 = sand.u32 1, %s757_s16   ;;  %s932_s1 = sshll.u32 %s922_s10, 6 }
  0x79   : > { %s218_s8 = scalar_lea.sflag [#allocation6], %s217_s26  ;;  %s935_s27 = scalar_lea.vmem [#allocation5], %s932_s1 }
  0x7a   : > { %680 = dma.done.wait (%p1045_p0), %s218_s8, 2048  }
  0x7b   : > { %682 = vsyncadd (%p1045_p0), %s218_s8, 4294965248  ;;  %v273_v0 = vlaneseq  ;;  %v263_v4 = vld [vmem:[%s212_s5] sm:$0x3]  ;;  %s942_s6 = scalar_lea.vmem [#allocation7], %s932_s1  ;;  %v289_v6 = vld [vmem:[%s935_s27] sm:$0xff]  ;;  %s958_s22 = scalar_lea.vmem [#allocation8], %s932_s1 }
  0x7c   : > { %v265_v5 = vld [vmem:[%s942_s6] sm:$0xff]  ;;  %v266_v9 = vld [vmem:[%s942_s6 + $0x8] sm:$0xff]  ;;  %v267_v11 = vld [vmem:[%s942_s6 + $0x10] sm:$0xff]  ;;  %s342_s20 = sshll.u32 %s958_s22, 4  ;;  %s473_s4 = sshll.u32 %s757_s16, 7  ;;  %s967_s20 = int_to_ptr.vmem [resolvable:$true] %s342_s20 }
  0x7d   : > { %v274_v1 = vshrl.u32 %v273_v0, 7  ;;  %v290_v10 = vld [vmem:[%s935_s27 + $0x8] sm:$0xff]  ;;  %v291_v12 = vld [vmem:[%s935_s27 + $0x10] sm:$0xff]  ;;  %v268_v13 = vld [vmem:[%s942_s6 + $0x18] sm:$0xff]  ;;  %s974_s25 = scalar_lea.hbm %s1025_s3, %s473_s4  ;;  %s330_s9 = scalar_lea.sflag [#allocation4], %s922_s10 }
  0x7e   : > { %v292_v14 = vld [vmem:[%s935_s27 + $0x18] sm:$0xff]  ;;  %v269_v20 = vld [vmem:[%s942_s6 + $0x20] sm:$0xff]  ;;  %v270_v26 = vld [vmem:[%s942_s6 + $0x28] sm:$0xff]  ;;  %s631_s29 = scalar_lea.vmem %s967_s20, 1024  ;;  %p1046_p5 = scmp.ne.s32.totalorder %s1034_s23, 0 }
  0x7f   : > { %v275_v2 = vsub.s32 1, %v274_v1  ;;  %v299_v3 = vsub.s32 0, %v274_v1  ;;  %v264_v19 = vld [vmem:[%s212_s5 + $0x2] sm:$0x3]  ;;  %v293_v21 = vld [vmem:[%s935_s27 + $0x20] sm:$0xff]  ;;  %v294_v27 = vld [vmem:[%s935_s27 + $0x28] sm:$0xff]  ;;  %p632_p13 = scmp.ne.s32.totalorder %s967_s20, %s631_s29 }
  0x80   : > { %v271_v28 = vld [vmem:[%s942_s6 + $0x30] sm:$0xff]  ;;  %v272_v34 = vld [vmem:[%s942_s6 + $0x38] sm:$0xff]  ;;  %s712_s0 = smov [#allocation8]  }
  0x81   : > { %v276_v7 = vrot.slane %v263_v4, %v275_v2  ;;  %v300_v8 = vrot.slane %v263_v4, %v299_v3  ;;  %v280_v31 = vrot.slane %v264_v19, %v275_v2  ;;  %v304_v32 = vrot.slane %v264_v19, %v299_v3  ;;  %v295_v33 = vld [vmem:[%s935_s27 + $0x30] sm:$0xff]  ;;  %v296_v35 = vld [vmem:[%s935_s27 + $0x38] sm:$0xff]  ;;  %p633_p6 = pnand %p632_p13, %p1046_p5  ;;  %s635_s28 = sshll.u32 %s712_s0, 4  ;;  %s636_s28 = int_to_ptr.vmem [resolvable:$false] %s635_s28 }
  0x82   : > { %s637_s30 = scalar_lea.vmem %s636_s28, 2048  ;;  %p638_p12 = scmp.lt.s32.totalorder %s967_s20, %s636_s28 }
  0x83   : > { %v281_v15 = vmul.f32 %v276_v7, %v265_v5  ;;  %v305_v16 = vmul.f32 %v300_v8, %v289_v6  ;;  %v282_v17 = vmul.f32 %v276_v7, %v266_v9  ;;  %v306_v18 = vmul.f32 %v300_v8, %v290_v10  ;;  %p634_p9 = pneg %p633_p6  ;;  %p639_p3 = scmp.lt.s32.totalorder %s637_s30, %s631_s29 }
  0x84   : > { %v283_v22 = vmul.f32 %v276_v7, %v267_v11  ;;  %v307_v23 = vmul.f32 %v300_v8, %v291_v12  ;;  %v284_v24 = vmul.f32 %v276_v7, %v268_v13  ;;  %v308_v25 = vmul.f32 %v300_v8, %v292_v14 }
  0x85   : > { %v313_v29 = vadd.f32 %v305_v16, %v281_v15  ;;  %v314_v30 = vadd.f32 %v306_v18, %v282_v17  ;;  %v285_v38 = vmul.f32 %v280_v31, %v269_v20  ;;  %v309_v39 = vmul.f32 %v304_v32, %v293_v21  ;;  %p640_p8 = por %p639_p3, %p638_p12 }
  0x86   : > { %v315_v36 = vadd.f32 %v307_v23, %v283_v22  ;;  %v316_v37 = vadd.f32 %v308_v25, %v284_v24  ;;  %v286_v40 = vmul.f32 %v280_v31, %v270_v26  ;;  %v310_v41 = vmul.f32 %v304_v32, %v294_v27 }
  0x87   : > { %321 = vst [vmem:[%s958_s22] sm:$0xff] %v313_v29  ;;  %322 = vst [vmem:[%s958_s22 + $0x8] sm:$0xff] %v314_v30  ;;  %v287_v42 = vmul.f32 %v280_v31, %v271_v28  ;;  %v311_v43 = vmul.f32 %v304_v32, %v295_v33  ;;  %v288_v44 = vmul.f32 %v280_v31, %v272_v34  ;;  %p641_p10 = pnand %p640_p8, %p634_p9 }
  0x88   : > { %323 = vst [vmem:[%s958_s22 + $0x10] sm:$0xff] %v315_v36  ;;  %324 = vst [vmem:[%s958_s22 + $0x18] sm:$0xff] %v316_v37  ;;  %v312_v45 = vmul.f32 %v304_v32, %v296_v35  ;;  %v317_v46 = vadd.f32 %v309_v39, %v285_v38  ;;  %v318_v47 = vadd.f32 %v310_v41, %v286_v40 }
  0x89   : > { %v319_v48 = vadd.f32 %v311_v43, %v287_v42 }
  0x8a   : > { %v320_v49 = vadd.f32 %v312_v45, %v288_v44  ;;  %325 = vst [vmem:[%s958_s22 + $0x20] sm:$0xff] %v317_v46  ;;  %326 = vst [vmem:[%s958_s22 + $0x28] sm:$0xff] %v318_v47 }
  0x8b   : > { %327 = vst [vmem:[%s958_s22 + $0x30] sm:$0xff] %v319_v48 }
  0x8c   : > { %328 = vst [vmem:[%s958_s22 + $0x38] sm:$0xff] %v320_v49 }
  0x8d   : > { %644 = shalt.err (!%p641_p10)
}
  0x8e   : > { %s645_s11 = scalar_lea.hbm %s974_s25, 1024  ;;  %s649_s5 = scalar_lea.hbm %s1025_s3, 2048 }
  0x8f   : > { %p646_p7 = scmp.ne.s32.totalorder %s974_s25, %s645_s11  ;;  %p650_p4 = scmp.lt.u32.totalorder %s974_s25, %s1025_s3 }
  0x90   : > { %p651_p1 = scmp.lt.u32.totalorder %s649_s5, %s645_s11  ;;  %p653_p13 = scmp.lt.u32.totalorder %s645_s11, %s974_s25 }
  0x91   : > { %p647_p11 = pnand %p646_p7, %p1046_p5 }
  0x92   : > { %p652_p0 = por %p651_p1, %p650_p4 }
  0x93   : > { %p648_p2 = pneg %p647_p11 }
  0x94   : > { %p654_p6 = por %p653_p13, %p652_p0 }
  0x96   : > { %p655_p9 = pnand %p654_p6, %p648_p2 }
  0x98   : > { %658 = shalt.err (!%p655_p9)
}
  0x99   : > { %s713_s8 = smov 128   ;;  %s714_s27 = smov 256  }
  0x9a   : > { %s715_s6 = smov 8  }
  0x9b   : > { %482 = dma.vmem_to_hbm [thread:$0]  (%p1046_p5), %s967_s20, 1024, %s974_s25, %s330_s9, %s713_s8, %s714_s27, %s715_s6  }
  0x9c PF: > { %s357_s22 = sand.u32 1, %s689_s12   ;;  %p1047_p12 = scmp.ne.s32.totalorder %s1035_s24, 0 }
  0x9d   : > { %p1048_p3 = scmp.ge.s32.totalorder %s701_s15, 2  ;;  %s358_s4 = scalar_lea.sflag [#allocation4], %s357_s22 }
  0x9f   : > { %p495_p8 = pnand %p1048_p3, %p1047_p12 }
  0xa1   : > { %684 = dma.done.wait (!%p495_p8), %s358_s4, 1024  }
  0xa2   : > { %686 = vsyncadd (!%p495_p8), %s358_s4, 4294966272  ;;  %p19_p10 = scmp.ge.s32.totalorder %s761_s18, 4   ;;  %s1049_s12 = smov %s693_s13 }
  0xa3   : > { %s1050_s13 = smov %s697_s14  ;;  %s1051_s14 = smov %s773_s21 }
  0xa4   : > { %s1052_s15 = smov %s761_s18  ;;  %21 = sbr.rel (!%p19_p10) target bundleno = 10 (0xa), region = 101 }
  0xab   :  { %363 = vsyncpa [#allocation3], 1 }
  0xac   :  { %365 = vsyncpa [#allocation3 + $0x1], 1 }
  0xad   :  { %366 = vsyncpa [#allocation6], 1 }
  0xae   :  { %368 = vsyncpa [#allocation6 + $0x1], 1 }
  0xaf   :  { %369 = vsyncpa [#allocation4], 1 }
  0xb0   :  { %371 = vsyncpa [#allocation4 + $0x1], 1 }

</bundles_post_ra>
